<compile_context>
chip_gen: v6e
topology: v6e:2x2x1
jax: 0.10.0
libtpu: 0.0.40
codegen_flags: <defaults>
</compile_context>

<pallas_src>
import functools

import jax
import jax.numpy as jnp
import numpy as np
from jax import lax
from jax.experimental import pallas as pl
from jax.experimental.pallas import tpu as pltpu

LAMDA = 0.5          # module default
_TM = 256            # pairwise i-tile (sublanes of the kernel block)
_TN_MAX = 2048       # pairwise j-tile upper bound (lanes of the kernel block)
_TILE_STATS = 512    # phase-1 sample tile
_PAD = 512           # sample padding granularity (keeps N/_TM even -> both v7x TCs busy)


# --------------------------------------------------------------------------- #
# Phase 1: per-sample statistics, lane-dense slab + per-tile partials          #
# --------------------------------------------------------------------------- #
def _stats_kernel(logits_ref, target_ref, slab_ref, part_ref, *, n_valid):
    x = logits_ref[...]                               # (C, T) f32, samples along lanes
    t = target_ref[...]                               # (1, T) i32
    c_dim, tile = x.shape

    xmax = jnp.max(x, axis=0, keepdims=True)          # (1, T)
    ex = jnp.exp(x - xmax)
    sden = jnp.sum(ex, axis=0, keepdims=True)         # (1, T)
    p = 1.0 / sden                                    # max softmax prob == exp(0)/sden

    cls = lax.broadcasted_iota(jnp.int32, (c_dim, tile), 0)
    # first arg-max index, straight from the logits (same tie-break as torch.max)
    pred = jnp.min(jnp.where(x >= xmax, cls, c_dim), axis=0, keepdims=True)

    # mask samples added by padding N up to a tile multiple
    idx = pl.program_id(0) * tile + lax.broadcasted_iota(jnp.int32, (1, tile), 1)
    valid = (idx < n_valid).astype(jnp.float32)

    correct = (pred == t).astype(jnp.float32)
    c_mask = correct * valid

    # cross-entropy terms
    lse = xmax + jnp.log(sden)
    onehot = (cls == t).astype(jnp.float32)
    x_t = jnp.sum(x * onehot, axis=0, keepdims=True)
    ce = (lse - x_t) * valid

    wc = (1.0 - p) * c_mask                           # (1-p) on correct samples
    wi = p * (1.0 - correct) * valid                  # p on incorrect samples
    ep = jnp.exp(2.5 * p)                             # exp factorization of the Laplacian
    em = jnp.exp(-2.5 * p)                            # kernel (padded samples harmless: w==0)

    # packed lane-dense stats slab: rows {wc, wi, e_plus, e_minus, 0, 0, 0, 0}
    r = lax.broadcasted_iota(jnp.int32, slab_ref.shape, 0)
    slab_ref[...] = (jnp.where(r == 0, wc, 0.0) + jnp.where(r == 1, wi, 0.0)
                     + jnp.where(r == 2, ep, 0.0) + jnp.where(r == 3, em, 0.0))

    # per-tile partials for the epilogue: row 0 lane 0 = #correct, row 1 lane 0 = sum CE
    pr = lax.broadcasted_iota(jnp.int32, part_ref.shape, 0)
    pc = lax.broadcasted_iota(jnp.int32, part_ref.shape, 1)
    sel_c = ((pr == 0) & (pc == 0)).astype(jnp.float32)
    sel_e = ((pr == 1) & (pc == 0)).astype(jnp.float32)
    part_ref[...] = (sel_c * jnp.sum(c_mask, keepdims=True)
                     + sel_e * jnp.sum(ce, keepdims=True))


# --------------------------------------------------------------------------- #
# Phase 2: tiled O(N^2) Laplacian-kernel accumulation                          #
# --------------------------------------------------------------------------- #
def _pairwise_kernel(icols_ref, slab_ref, parts_ref, sc_acc, si_acc):
    j = pl.program_id(1)

    @pl.when(j == 0)
    def _():
        sc_acc[...] = jnp.zeros_like(sc_acc)
        si_acc[...] = jnp.zeros_like(si_acc)

    ep_i = icols_ref[:, 2:3]                          # (TM, 1)  exp(+2.5 p_i)
    em_i = icols_ref[:, 3:4]                          # (TM, 1)  exp(-2.5 p_i)
    ep_j = slab_ref[2:3, :]                           # (1, TN)
    em_j = slab_ref[3:4, :]                           # (1, TN)
    # Laplacian kernel block without per-element exp:
    #   exp(-2.5 |p_i - p_j|) = min(e-_i * e+_j, e+_i * e-_j)
    k_blk = jnp.minimum(em_i * ep_j, ep_i * em_j)     # (TM, TN)

    # row-sum restructuring: accumulate s_c = K @ wc, s_i = K @ wi across the j sweep
    wc_j = slab_ref[0:1, :]
    wi_j = slab_ref[1:2, :]
    sc_acc[...] += jnp.sum(k_blk * wc_j, axis=1, keepdims=True)
    si_acc[...] += jnp.sum(k_blk * wi_j, axis=1, keepdims=True)

    # single write of the per-i-block partial sums, only on the last j step
    @pl.when(j == pl.num_programs(1) - 1)
    def _():
        wc_i = icols_ref[:, 0:1]
        wi_i = icols_ref[:, 1:2]
        cc = jnp.sum(wc_i * sc_acc[...], keepdims=True)   # (1, 1)
        ii = jnp.sum(wi_i * si_acc[...], keepdims=True)
        ci = jnp.sum(wc_i * si_acc[...], keepdims=True)
        rows = lax.broadcasted_iota(jnp.int32, parts_ref.shape, 0)
        lanes = lax.broadcasted_iota(jnp.int32, parts_ref.shape, 1)
        sel_cc = ((rows == 0) & (lanes == 0)).astype(jnp.float32)
        sel_ii = ((rows == 0) & (lanes == 1)).astype(jnp.float32)
        sel_ci = ((rows == 0) & (lanes == 2)).astype(jnp.float32)
        parts_ref[...] = sel_cc * cc + sel_ii * ii + sel_ci * ci


# --------------------------------------------------------------------------- #
# Phase 3: scalar epilogue (O(nb) inputs only)                                 #
# --------------------------------------------------------------------------- #
def _finalize_kernel(part_ref, pair_ref, out_ref, *, n_valid, lamda):
    n_f = float(max(n_valid, 1))

    part = part_ref[...]                              # (8, nbs*128)
    pr = lax.broadcasted_iota(jnp.int32, part.shape, 0)
    m = jnp.sum(jnp.where(pr == 0, part, 0.0))        # # correctly classified
    ce = jnp.sum(jnp.where(pr == 1, part, 0.0)) / n_f # mean cross-entropy
    n = float(n_valid) - m                            # # incorrectly classified

    pair = pair_ref[...]                              # (nb_i*8, 128): lanes 0/1/2 = cc/ii/ci
    lanes = lax.broadcasted_iota(jnp.int32, pair.shape, 1)
    cc_num = jnp.sum(jnp.where(lanes == 0, pair, 0.0))
    ii_num = jnp.sum(jnp.where(lanes == 1, pair, 0.0))
    ci_num = jnp.sum(jnp.where(lanes == 2, pair, 0.0))

    k_f = jnp.maximum(m, 1.0)                         # == k   (non-degenerate case)
    kp_f = jnp.maximum(n, 1.0)                        # == k_p (non-degenerate case)
    correct_correct_vals = cc_num / (k_f * k_f)
    incorrect_incorrect_vals = ii_num / (kp_f * kp_f)
    correct_incorrect_vals = ci_num / (k_f * kp_f)

    mmd_error = (correct_correct_vals / (m * m + 1e-5)
                 + incorrect_incorrect_vals / (n * n + 1e-5)
                 - 2.0 * correct_incorrect_vals / (m * n + 1e-5))
    # intentional deviation from the torch reference: clamp before sqrt so fp error
    # (or the degenerate cond==0 path) can never produce a NaN.
    mmd_error = jnp.maximum(mmd_error, 0.0)

    cond = jnp.where(m > 0.0, 1.0, 0.0) * jnp.where(n > 0.0, 1.0, 0.0)
    out_ref[0, 0] = ce + lamda * jnp.maximum(cond * jnp.sqrt(mmd_error + 1e-10), 0.0)


# --------------------------------------------------------------------------- #
# Wrapper                                                                      #
# --------------------------------------------------------------------------- #
def mmce_weighted_loss(logits, target, lamda=LAMDA):
    """MMCE_weighted forward. logits: (N, C) or (N, C, *spatial); target: (N,)/(N, *spatial)."""
    # Flatten exactly like the torch module, but samples along lanes: (C, N).
    if logits.ndim > 2:
        b, c0 = logits.shape[0], logits.shape[1]
        logits_t = jnp.transpose(logits.reshape(b, c0, -1), (1, 0, 2)).reshape(c0, -1)
    else:
        logits_t = logits.T
    logits_t = logits_t.astype(jnp.float32)
    target = target.reshape(-1).astype(jnp.int32)

    c_dim, n_real = logits_t.shape
    n_pad = max(_PAD, ((n_real + _PAD - 1) // _PAD) * _PAD)
    if n_pad != n_real:
        logits_t = jnp.pad(logits_t, ((0, 0), (0, n_pad - n_real)))
        target = jnp.pad(target, (0, n_pad - n_real))
    target_row = target.reshape(1, n_pad)

    # ---- phase 1: per-sample stats (lane-dense slab + per-tile partials) ----
    ts = _TILE_STATS
    nbs = n_pad // ts
    # TODO(synk): for very large C, switch the (C, tile) block to an online-softmax
    # reduction axis so the phase-1 block fits v7x's 64 MiB VMEM.
    slab, part = pl.pallas_call(
        functools.partial(_stats_kernel, n_valid=n_real),
        grid=(nbs,),
        in_specs=[pl.BlockSpec((c_dim, ts), lambda i: (0, i)),
                  pl.BlockSpec((1, ts), lambda i: (0, i))],
        out_specs=(pl.BlockSpec((8, ts), lambda i: (0, i)),
                   pl.BlockSpec((8, 128), lambda i: (0, i))),
        out_shape=(jax.ShapeDtypeStruct((8, n_pad), jnp.float32),
                   jax.ShapeDtypeStruct((8, nbs * 128), jnp.float32)),
        compiler_params=pltpu.CompilerParams(dimension_semantics=("parallel",)),
    )(logits_t, target_row)

    # The i-side of phase 2 needs sample-along-sublane (column) layout for the outer
    # broadcast; one tiny O(4N) XLA transpose, re-read only once per i block.
    icols = jnp.transpose(slab[0:4, :])               # (n_pad, 4): wc, wi, e+, e-

    # ---- phase 2: tiled pairwise term ---------------------------------------
    tm = _TM
    tn = max(t for t in (_TN_MAX, 1024, 512, 256) if n_pad % t == 0)
    nb_i, nb_j = n_pad // tm, n_pad // tn
    pair = pl.pallas_call(
        _pairwise_kernel,
        grid=(nb_i, nb_j),
        in_specs=[pl.BlockSpec((tm, 4), lambda i, j: (i, 0)),
                  pl.BlockSpec((8, tn), lambda i, j: (0, j))],
        out_specs=pl.BlockSpec((8, 128), lambda i, j: (i, 0)),
        out_shape=jax.ShapeDtypeStruct((nb_i * 8, 128), jnp.float32),
        scratch_shapes=[pltpu.VMEM((tm, 1), jnp.float32),
                        pltpu.VMEM((tm, 1), jnp.float32)],
        compiler_params=pltpu.CompilerParams(
            dimension_semantics=("parallel", "arbitrary"),
            vmem_limit_bytes=32 * 1024 * 1024),
    )(icols, slab)

    # ---- phase 3: scalar epilogue -------------------------------------------
    out = pl.pallas_call(
        functools.partial(_finalize_kernel, n_valid=n_real, lamda=lamda),
        in_specs=[pl.BlockSpec(memory_space=pltpu.MemorySpace.VMEM)] * 2,
        out_specs=pl.BlockSpec(memory_space=pltpu.MemorySpace.VMEM),
        out_shape=jax.ShapeDtypeStruct((1, 1), jnp.float32),
    )(part, pair)
    return out[0, 0]


# --------------------------------------------------------------------------- #
# Host-side literal reference (incl. topk), for validation                     #
# --------------------------------------------------------------------------- #
def _reference_numpy(logits, target, lamda=LAMDA):
    x = np.asarray(logits, np.float64)
    t = np.asarray(target)
    N = x.shape[0]
    ex = np.exp(x - x.max(1, keepdims=True))
    probs = ex / ex.sum(1, keepdims=True)
    pmax = probs.max(1)
    pred = probs.argmax(1)
    correct = (pred == t).astype(np.float64)
    k = int(correct.sum())
    kp = int((1.0 - correct).sum())
    cond = 1 if (k > 0 and kp > 0) else 0
    kk = max(k, 1) * cond + (1 - cond) * 2
    kkp = max(kp, 1) * cond + (1 - cond) * (N - 2)
    cp = np.sort(pmax * correct)[::-1][:kk]
    ip = np.sort(pmax * (1.0 - correct))[::-1][:kkp]

    def kern(a, b):
        return np.exp(-np.abs(a[:, None] - b[None, :]) / 0.4)

    cc = np.mean(kern(cp, cp) * np.outer(1.0 - cp, 1.0 - cp))
    ii = np.mean(kern(ip, ip) * np.outer(ip, ip))
    ci = np.mean(kern(cp, ip) * np.outer(1.0 - cp, ip))
    m = correct.sum()
    n = (1.0 - correct).sum()
    mmd = cc / (m * m + 1e-5) + ii / (n * n + 1e-5) - 2.0 * ci / (m * n + 1e-5)
    lse = np.log(ex.sum(1)) + x.max(1)
    ce = np.mean(lse - x[np.arange(N), t])
    return ce + lamda * max(cond * np.sqrt(mmd + 1e-10), 0.0)


if __name__ == "__main__":
    key = jax.random.PRNGKey(0)
    k1, k2 = jax.random.split(key)
    B, C, H, W = 2, 4, 16, 16                        # N = B*H*W = 512 flattened samples
    logits4d = jax.random.normal(k1, (B, C, H, W), jnp.float32) * 2.0
    target3d = jax.random.randint(k2, (B, H, W), 0, C, jnp.int32)

    # flatten the same way the module does; force both correct & incorrect samples
    flat_logits = logits4d.reshape(B, C, -1).transpose(0, 2, 1).reshape(-1, C)
    pred = jnp.argmax(flat_logits, axis=1).astype(jnp.int32)
    flat_t = target3d.reshape(-1)
    flat_t = flat_t.at[:8].set(pred[:8])             # guarantee some correct
    flat_t = flat_t.at[8].set((pred[8] + 1) % C)     # guarantee some incorrect
    target3d = flat_t.reshape(B, H, W)

    loss = mmce_weighted_loss(logits4d, target3d)
    loss = jax.block_until_ready(loss)

    ref = _reference_numpy(np.asarray(flat_logits), np.asarray(flat_t))
    assert np.isclose(float(loss), float(ref), rtol=1e-3, atol=1e-5), \
        (float(loss), float(ref))
    print("KERNEL_OK")
</pallas_src>

<mosaic_0001>
module attributes {stable_mosaic.version = 11 : i64} {
  func.func @_stats_kernel(%arg0: i32, %arg1: memref<4x512xf32, #tpu.memory_space<vmem>>, %arg2: memref<1x512xi32, #tpu.memory_space<vmem>>, %arg3: memref<8x512xf32, #tpu.memory_space<vmem>>, %arg4: memref<8x128xf32, #tpu.memory_space<vmem>>) attributes {dimension_semantics = [#tpu.dimension_semantics<parallel>], iteration_bounds = array<i64: 1>, scalar_prefetch = 0 : i64, scratch_operands = 0 : i64, tpu.core_type = #tpu.core_type<tc>, window_params = [{transform_indices = @transform_0, window_bounds = array<i64: 4, 512>}, {transform_indices = @transform_1, window_bounds = array<i64: 1, 512>}, {transform_indices = @transform_2, window_bounds = array<i64: 8, 512>}, {transform_indices = @transform_3, window_bounds = array<i64: 8, 128>}]} {
    %c0 = arith.constant 0 : index
    %c0_0 = arith.constant 0 : index
    %0 = vector.load %arg1[%c0, %c0_0] : memref<4x512xf32, #tpu.memory_space<vmem>>, vector<4x512xf32>
    %c0_1 = arith.constant 0 : index
    %c0_2 = arith.constant 0 : index
    %1 = vector.load %arg2[%c0_1, %c0_2] : memref<1x512xi32, #tpu.memory_space<vmem>>, vector<1x512xi32>
    %cst = arith.constant dense<0xFF800000> : vector<512xf32>
    %2 = vector.multi_reduction <maximumf>, %0, %cst [0] : vector<4x512xf32> to vector<512xf32>
    %3 = vector.shape_cast %2 : vector<512xf32> to vector<1x512xf32>
    %4 = vector.broadcast %3 : vector<1x512xf32> to vector<4x512xf32>
    %5 = arith.subf %0, %4 : vector<4x512xf32>
    %6 = math.exp %5 : vector<4x512xf32>
    %cst_3 = arith.constant dense<0.000000e+00> : vector<512xf32>
    %7 = vector.multi_reduction <add>, %6, %cst_3 [0] : vector<4x512xf32> to vector<512xf32>
    %8 = vector.shape_cast %7 : vector<512xf32> to vector<1x512xf32>
    %cst_4 = arith.constant 1.000000e+00 : f32
    %9 = vector.broadcast %cst_4 : f32 to vector<1x512xf32>
    %10 = arith.divf %9, %8 : vector<1x512xf32>
    %11 = tpu.iota {dimensions = array<i32: 0>} : vector<4x512xi32>
    %12 = vector.broadcast %3 : vector<1x512xf32> to vector<4x512xf32>
    %13 = arith.cmpf oge, %0, %12 : vector<4x512xf32>
    %c4_i32 = arith.constant 4 : i32
    %14 = vector.broadcast %c4_i32 : i32 to vector<4x512xi32>
    %15 = arith.select %13, %11, %14 : vector<4x512xi1>, vector<4x512xi32>
    %cst_5 = arith.constant dense<2147483647> : vector<512xi32>
    %16 = vector.multi_reduction <minsi>, %15, %cst_5 [0] : vector<4x512xi32> to vector<512xi32>
    %17 = vector.shape_cast %16 : vector<512xi32> to vector<1x512xi32>
    %c512_i32 = arith.constant 512 : i32
    %18 = arith.muli %arg0, %c512_i32 : i32
    %19 = tpu.iota {dimensions = array<i32: 1>} : vector<1x512xi32>
    %20 = vector.broadcast %18 : i32 to vector<1x512xi32>
    %21 = arith.addi %20, %19 : vector<1x512xi32>
    %c512_i32_6 = arith.constant 512 : i32
    %22 = vector.broadcast %c512_i32_6 : i32 to vector<1x512xi32>
    %23 = arith.cmpi slt, %21, %22 : vector<1x512xi32>
    %24 = arith.extui %23 : vector<1x512xi1> to vector<1x512xi32>
    %25 = arith.sitofp %24 : vector<1x512xi32> to vector<1x512xf32>
    %26 = arith.cmpi eq, %17, %1 : vector<1x512xi32>
    %27 = arith.extui %26 : vector<1x512xi1> to vector<1x512xi32>
    %28 = arith.sitofp %27 : vector<1x512xi32> to vector<1x512xf32>
    %29 = arith.mulf %28, %25 : vector<1x512xf32>
    %30 = math.log %8 : vector<1x512xf32>
    %31 = arith.addf %3, %30 : vector<1x512xf32>
    %32 = vector.broadcast %1 : vector<1x512xi32> to vector<4x512xi32>
    %33 = arith.cmpi eq, %11, %32 : vector<4x512xi32>
    %34 = arith.extui %33 : vector<4x512xi1> to vector<4x512xi32>
    %35 = arith.sitofp %34 : vector<4x512xi32> to vector<4x512xf32>
    %36 = arith.mulf %0, %35 : vector<4x512xf32>
    %cst_7 = arith.constant dense<0.000000e+00> : vector<512xf32>
    %37 = vector.multi_reduction <add>, %36, %cst_7 [0] : vector<4x512xf32> to vector<512xf32>
    %38 = vector.shape_cast %37 : vector<512xf32> to vector<1x512xf32>
    %39 = arith.subf %31, %38 : vector<1x512xf32>
    %40 = arith.mulf %39, %25 : vector<1x512xf32>
    %cst_8 = arith.constant 1.000000e+00 : f32
    %41 = vector.broadcast %cst_8 : f32 to vector<1x512xf32>
    %42 = arith.subf %41, %10 : vector<1x512xf32>
    %43 = arith.mulf %42, %29 : vector<1x512xf32>
    %cst_9 = arith.constant 1.000000e+00 : f32
    %44 = vector.broadcast %cst_9 : f32 to vector<1x512xf32>
    %45 = arith.subf %44, %28 : vector<1x512xf32>
    %46 = arith.mulf %10, %45 : vector<1x512xf32>
    %47 = arith.mulf %46, %25 : vector<1x512xf32>
    %cst_10 = arith.constant 2.500000e+00 : f32
    %48 = vector.broadcast %cst_10 : f32 to vector<1x512xf32>
    %49 = arith.mulf %48, %10 : vector<1x512xf32>
    %50 = math.exp %49 : vector<1x512xf32>
    %cst_11 = arith.constant -2.500000e+00 : f32
    %51 = vector.broadcast %cst_11 : f32 to vector<1x512xf32>
    %52 = arith.mulf %51, %10 : vector<1x512xf32>
    %53 = math.exp %52 : vector<1x512xf32>
    %54 = tpu.iota {dimensions = array<i32: 0>} : vector<8x512xi32>
    %c0_i32 = arith.constant 0 : i32
    %55 = vector.broadcast %c0_i32 : i32 to vector<8x512xi32>
    %56 = arith.cmpi eq, %54, %55 : vector<8x512xi32>
    %cst_12 = arith.constant 0.000000e+00 : f32
    %57 = vector.shape_cast %43 : vector<1x512xf32> to vector<1x512xf32>
    %58 = vector.broadcast %57 : vector<1x512xf32> to vector<8x512xf32>
    %59 = vector.broadcast %cst_12 : f32 to vector<8x512xf32>
    %60 = arith.select %56, %58, %59 : vector<8x512xi1>, vector<8x512xf32>
    %c1_i32 = arith.constant 1 : i32
    %61 = vector.broadcast %c1_i32 : i32 to vector<8x512xi32>
    %62 = arith.cmpi eq, %54, %61 : vector<8x512xi32>
    %cst_13 = arith.constant 0.000000e+00 : f32
    %63 = vector.shape_cast %47 : vector<1x512xf32> to vector<1x512xf32>
    %64 = vector.broadcast %63 : vector<1x512xf32> to vector<8x512xf32>
    %65 = vector.broadcast %cst_13 : f32 to vector<8x512xf32>
    %66 = arith.select %62, %64, %65 : vector<8x512xi1>, vector<8x512xf32>
    %67 = arith.addf %60, %66 : vector<8x512xf32>
    %c2_i32 = arith.constant 2 : i32
    %68 = vector.broadcast %c2_i32 : i32 to vector<8x512xi32>
    %69 = arith.cmpi eq, %54, %68 : vector<8x512xi32>
    %cst_14 = arith.constant 0.000000e+00 : f32
    %70 = vector.shape_cast %50 : vector<1x512xf32> to vector<1x512xf32>
    %71 = vector.broadcast %70 : vector<1x512xf32> to vector<8x512xf32>
    %72 = vector.broadcast %cst_14 : f32 to vector<8x512xf32>
    %73 = arith.select %69, %71, %72 : vector<8x512xi1>, vector<8x512xf32>
    %74 = arith.addf %67, %73 : vector<8x512xf32>
    %c3_i32 = arith.constant 3 : i32
    %75 = vector.broadcast %c3_i32 : i32 to vector<8x512xi32>
    %76 = arith.cmpi eq, %54, %75 : vector<8x512xi32>
    %cst_15 = arith.constant 0.000000e+00 : f32
    %77 = vector.shape_cast %53 : vector<1x512xf32> to vector<1x512xf32>
    %78 = vector.broadcast %77 : vector<1x512xf32> to vector<8x512xf32>
    %79 = vector.broadcast %cst_15 : f32 to vector<8x512xf32>
    %80 = arith.select %76, %78, %79 : vector<8x512xi1>, vector<8x512xf32>
    %81 = arith.addf %74, %80 : vector<8x512xf32>
    %c0_16 = arith.constant 0 : index
    %c0_17 = arith.constant 0 : index
    %82 = vector.load %arg3[%c0_16, %c0_17] : memref<8x512xf32, #tpu.memory_space<vmem>>, vector<8x512xf32>
    tpu.vector_store %arg3[%c0_16, %c0_17], %81 {strides = array<i32>} : memref<8x512xf32, #tpu.memory_space<vmem>>, vector<8x512xf32>,
    %83 = tpu.iota {dimensions = array<i32: 0>} : vector<8x128xi32>
    %84 = tpu.iota {dimensions = array<i32: 1>} : vector<8x128xi32>
    %c0_i32_18 = arith.constant 0 : i32
    %85 = vector.broadcast %c0_i32_18 : i32 to vector<8x128xi32>
    %86 = arith.cmpi eq, %83, %85 : vector<8x128xi32>
    %c0_i32_19 = arith.constant 0 : i32
    %87 = vector.broadcast %c0_i32_19 : i32 to vector<8x128xi32>
    %88 = arith.cmpi eq, %84, %87 : vector<8x128xi32>
    %89 = arith.andi %86, %88 : vector<8x128xi1>
    %90 = arith.extui %89 : vector<8x128xi1> to vector<8x128xi32>
    %91 = arith.sitofp %90 : vector<8x128xi32> to vector<8x128xf32>
    %c1_i32_20 = arith.constant 1 : i32
    %92 = vector.broadcast %c1_i32_20 : i32 to vector<8x128xi32>
    %93 = arith.cmpi eq, %83, %92 : vector<8x128xi32>
    %c0_i32_21 = arith.constant 0 : i32
    %94 = vector.broadcast %c0_i32_21 : i32 to vector<8x128xi32>
    %95 = arith.cmpi eq, %84, %94 : vector<8x128xi32>
    %96 = arith.andi %93, %95 : vector<8x128xi1>
    %97 = arith.extui %96 : vector<8x128xi1> to vector<8x128xi32>
    %98 = arith.sitofp %97 : vector<8x128xi32> to vector<8x128xf32>
    %99 = vector.shape_cast %29 : vector<1x512xf32> to vector<1x1x512xf32>
    %cst_22 = arith.constant dense<0.000000e+00> : vector<1xf32>
    %100 = vector.multi_reduction <add>, %99, %cst_22 [1, 2] : vector<1x1x512xf32> to vector<1xf32>
    %101 = vector.shape_cast %100 : vector<1xf32> to vector<1x1x1xf32>
    %102 = vector.extract %101[0, 0, 0] : f32 from vector<1x1x1xf32>
    %103 = vector.broadcast %102 : f32 to vector<1x1xf32>
    %104 = vector.broadcast %103 : vector<1x1xf32> to vector<8x128xf32>
    %105 = arith.mulf %91, %104 : vector<8x128xf32>
    %106 = vector.shape_cast %40 : vector<1x512xf32> to vector<1x1x512xf32>
    %cst_23 = arith.constant dense<0.000000e+00> : vector<1xf32>
    %107 = vector.multi_reduction <add>, %106, %cst_23 [1, 2] : vector<1x1x512xf32> to vector<1xf32>
    %108 = vector.shape_cast %107 : vector<1xf32> to vector<1x1x1xf32>
    %109 = vector.extract %108[0, 0, 0] : f32 from vector<1x1x1xf32>
    %110 = vector.broadcast %109 : f32 to vector<1x1xf32>
    %111 = vector.broadcast %110 : vector<1x1xf32> to vector<8x128xf32>
    %112 = arith.mulf %98, %111 : vector<8x128xf32>
    %113 = arith.addf %105, %112 : vector<8x128xf32>
    %c0_24 = arith.constant 0 : index
    %c0_25 = arith.constant 0 : index
    %114 = vector.load %arg4[%c0_24, %c0_25] : memref<8x128xf32, #tpu.memory_space<vmem>>, vector<8x128xf32>
    tpu.vector_store %arg4[%c0_24, %c0_25], %113 {strides = array<i32>} : memref<8x128xf32, #tpu.memory_space<vmem>>, vector<8x128xf32>,
    return
  }
  func.func @transform_0(%arg0: i32) -> (i32, i32) {
    %c0_i32 = arith.constant 0 : i32
    %c0_i32_0 = arith.constant 0 : i32
    return %c0_i32, %arg0 : i32, i32
  }
  func.func @transform_1(%arg0: i32) -> (i32, i32) {
    %c0_i32 = arith.constant 0 : i32
    %c0_i32_0 = arith.constant 0 : i32
    return %c0_i32, %arg0 : i32, i32
  }
  func.func @transform_2(%arg0: i32) -> (i32, i32) {
    %c0_i32 = arith.constant 0 : i32
    %c0_i32_0 = arith.constant 0 : i32
    return %c0_i32, %arg0 : i32, i32
  }
  func.func @transform_3(%arg0: i32) -> (i32, i32) {
    %c0_i32 = arith.constant 0 : i32
    %c0_i32_0 = arith.constant 0 : i32
    return %c0_i32, %arg0 : i32, i32
  }
}

</mosaic_0001>

<bundles_post_ra>
// kernel: tpu_custom_call.1
= control target key start
LH: loop header
LB: loop body
LE: loop exit
PB: predicated region body
PF: predicated region fallthrough
CT: control target
= control target key end

     0   :  { %9 = vsyncpa [#allocation3], 0  ;;  %s877_s0 = inlined_call_operand.hbm [shape: f32[4,512], index: 0, kind: input, shape index: {}]   ;;  %s878_s1 = inlined_call_operand.hbm [shape: s32[1,512], index: 1, kind: input, shape index: {}]   ;;  %s879_s2 = inlined_call_operand.hbm [shape: f32[8,512], index: 2, kind: output, shape index: {0}]   ;;  %s880_s3 = inlined_call_operand.hbm [shape: f32[8,128], index: 3, kind: output, shape index: {1}]  }
   0x1   :  { %10 = vsyncpa [#allocation6], 0 }
   0x2   :  { %11 = vsyncpa [#allocation4], 0 }
   0x3   :  { %12 = vsyncpa [#allocation9], 0  ;;  %s653_s12 = smov [#allocation2]   ;;  %s654_s14 = smov [#allocation5]  }
   0x4   :  { %s19_s13 = sshll.u32 %s653_s12, 4  ;;  %s29_s15 = sshll.u32 %s654_s14, 4  ;;  %s20_s13 = int_to_ptr.vmem [resolvable:$true] %s19_s13  ;;  %s30_s15 = int_to_ptr.vmem [resolvable:$true] %s29_s15 }
   0x5   :  { %s573_s16 = scalar_lea.vmem %s20_s13, 256  ;;  %p578_p1 = scmp.lt.s32.totalorder %s20_s13, %s20_s13 }
   0x6   :  { %p574_p0 = scmp.ne.s32.totalorder %s20_s13, %s573_s16  ;;  %p579_p2 = scmp.lt.s32.totalorder %s573_s16, %s573_s16 }
   0x8   :  { %p580_p3 = por %p579_p2, %p578_p1 }
   0xa   :  { %p581_p4 = pnand %p580_p3, %p574_p0 }
   0xc   :  { %584 = shalt.err (!%p581_p4)
}
   0xd   :  { %22 = dma.hbm_to_vmem [thread:$0]  %s877_s0, 256, %s20_s13, [#allocation3]  }
   0xe   :  { %s593_s19 = scalar_lea.vmem %s30_s15, 64  ;;  %p598_p6 = scmp.lt.s32.totalorder %s30_s15, %s30_s15 }
   0xf   :  { %p594_p5 = scmp.ne.s32.totalorder %s30_s15, %s593_s19  ;;  %p599_p7 = scmp.lt.s32.totalorder %s593_s19, %s593_s19 }
  0x11   :  { %p600_p8 = por %p599_p7, %p598_p6 }
  0x13   :  { %p601_p9 = pnand %p600_p8, %p594_p5 }
  0x15   :  { %604 = shalt.err (!%p601_p9)
}
  0x16   :  { %32 = dma.hbm_to_vmem [thread:$0]  %s878_s1, 64, %s30_s15, [#allocation6]  }
  0x17   :  { %645 = dma.done.wait [#allocation3], 256  }
  0x18   :  { %646 = vsyncadd [#allocation3], 4294967040 }
  0x19   :  { %647 = dma.done.wait [#allocation6], 64  }
  0x1a   :  { %648 = vsyncadd [#allocation6], 4294967232  ;;  %vm48_vm0 = vcmask 1043456   ;;  %v685_v0 = vld [vmem:[#allocation2] sm:$0xff]  ;;  %v687_v1 = vld [vmem:[#allocation2 + $0x8] sm:$0xff]  ;;  %v133_v10 = vlaneseq  ;;  %vm438_vm15 = vcmask 1040384  }
  0x1b   :  { %v44_v2 = vcombine.high %v685_v0, %v685_v0  ;;  %v45_v3 = vcombine.high %v687_v1, %v687_v1  ;;  %v49_v4 = vsel %vm48_vm0, %v685_v0, -inf  ;;  %v63_v5 = vsel %vm48_vm0, %v687_v1, -inf  ;;  %v41_v37 = vld [vmem:[#allocation5] sm:$0xf]  ;;  %s657_s0 = smov [#allocation7]  }
  0x1c   :  { %v50_v6 = vrot.slane %v49_v4, 4  ;;  %v64_v7 = vrot.slane %v63_v5, 4  ;;  %v655_v11 = vmov 839922192   ;;  %v700_v21 = vshrl.u32 %v133_v10, 7  ;;  %s483_s1 = sshll.u32 %s657_s0, 4  ;;  %s484_s1 = int_to_ptr.vmem [resolvable:$true] %s483_s1 }
  0x1d   :  { %v56_v8 = vsel %vm48_vm0, %v44_v2, -inf  ;;  %v70_v9 = vsel %vm48_vm0, %v45_v3, -inf  ;;  %v138_v12 = vunpack.c.l.s4 %v655_v11  ;;  %s605_s22 = scalar_lea.vmem %s484_s1, 512  ;;  %p610_p11 = scmp.lt.s32.totalorder %s484_s1, %s484_s1 }
  0x1e   :  { %v51_v13 = vmax.f32 %v49_v4, %v50_v6  ;;  %v57_v14 = vrot.slane %v56_v8, 4  ;;  %v65_v15 = vmax.f32 %v63_v5, %v64_v7  ;;  %v71_v16 = vrot.slane %v70_v9, 4  ;;  %p606_p10 = scmp.ne.s32.totalorder %s484_s1, %s605_s22  ;;  %p611_p12 = scmp.lt.s32.totalorder %s605_s22, %s605_s22 }
  0x1f   :  { %v139_v22 = vunpack.c.0.s8 %v138_v12  ;;  %v708_v36 = vsub.s32 0, %v700_v21  ;;  %v217_v41 = vsub.s32 1, %v700_v21  ;;  %v221_v42 = vsub.s32 2, %v700_v21 }
  0x20   :  { %v52_v17 = vrot.slane %v51_v13, 2  ;;  %v58_v18 = vmax.f32 %v56_v8, %v57_v14  ;;  %v66_v19 = vrot.slane %v65_v15, 2  ;;  %v72_v20 = vmax.f32 %v70_v9, %v71_v16  ;;  %p612_p13 = por %p611_p12, %p610_p11 }
  0x21   :  { %v142_v31 = vsub.s32 %v139_v22, %v700_v21  ;;  %v722_v45 = vrot.slane %v41_v37, %v708_v36  ;;  %v225_v46 = vsub.s32 3, %v700_v21  ;;  %v729_v51 = vrot.slane %v41_v37, %v217_v41 }
  0x22   :  { %v53_v23 = vmax.f32 %v51_v13, %v52_v17  ;;  %v59_v24 = vrot.slane %v58_v18, 2  ;;  %v67_v25 = vmax.f32 %v65_v15, %v66_v19  ;;  %v73_v26 = vrot.slane %v72_v20, 2  ;;  %p613_p0 = pnand %p612_p13, %p606_p10 }
  0x23   :  { %v143_v40 = vrot.slane %v700_v21, %v142_v31  ;;  %v731_v52 = vrot.slane %v41_v37, %v221_v42  ;;  %v735_v59 = vrot.slane %v41_v37, %v225_v46  ;;  %vm255_vm5 = vcmp.eq.s32.totalorder %v700_v21, %v722_v45 }
  0x24   :  { %v54_v27 = vrot.slane %v53_v23, 1  ;;  %v60_v28 = vmax.f32 %v58_v18, %v59_v24  ;;  %v68_v29 = vrot.slane %v67_v25, 1  ;;  %v74_v30 = vmax.f32 %v72_v20, %v73_v26 }
  0x25   :  { %vm256_vm6 = vcmp.eq.s32.totalorder %v700_v21, %v729_v51  ;;  %vm257_vm9 = vcmp.eq.s32.totalorder %v700_v21, %v731_v52  ;;  %vm258_vm11 = vcmp.eq.s32.totalorder %v700_v21, %v735_v59  ;;  %v656_v14 = vmov 0.0  }
  0x26   :  { %v703_v32 = vmax.f32 %v53_v23, %v54_v27  ;;  %v61_v33 = vrot.slane %v60_v28, 1  ;;  %v705_v34 = vmax.f32 %v67_v25, %v68_v29  ;;  %v75_v35 = vrot.slane %v74_v30, 1 }
  0x27   :  { %v511_v15 = vsel %vm255_vm5, 1.0, %v656_v14  ;;  %v512_v16 = vsel %vm256_vm6, 1.0, %v656_v14  ;;  %v513_v25 = vsel %vm257_vm9, 1.0, %v656_v14  ;;  %v514_v27 = vsel %vm258_vm11, 1.0, %v656_v14 }
  0x28   :  { %v710_v38 = vmax.f32 %v60_v28, %v61_v33  ;;  %v712_v39 = vmax.f32 %v74_v30, %v75_v35  ;;  %v271_v28 = vcombine.low %v511_v15, %v512_v16  ;;  %vm363_vm9 = vcmp.eq.s32.totalorder %v700_v21, 0 }
  0x29   :  { %vm418_vm11 = vcmp.eq.s32.totalorder %v700_v21, 3 }
  0x2a   :  { %v81_v43 = vcombine.low %v703_v32, %v710_v38  ;;  %v82_v44 = vcombine.low %v705_v34, %v712_v39 }
  0x2c   :  { %v86_v47 = vsub.f32 %v687_v1, %v82_v44  ;;  %vm135_vm1 = vcmp.ge.f32.partialorder %v685_v0, %v81_v43  ;;  %vm136_vm2 = vcmp.ge.f32.partialorder %v687_v1, %v82_v44  ;;  %v85_v48 = vsub.f32 %v685_v0, %v81_v43 }
  0x2d   :  { %v144_v49 = vsel %vm135_vm1, %v143_v40, 4  ;;  %v145_v50 = vsel %vm136_vm2, %v143_v40, 4  ;;  %v272_v44 = vcombine.low %v513_v25, %v514_v27 }
  0x2e   :  { %v89_v53 = vmul.f32 1.442695, %v86_v47  ;;  %v146_v54 = vcombine.high %v144_v49, %v144_v49  ;;  %v147_v55 = vcombine.high %v145_v50, %v145_v50  ;;  %v148_v56 = vsel %vm48_vm0, %v144_v49, 2147483647 }
  0x2f   :  { %v149_v57 = vrot.slane %v148_v56, 4  ;;  %v168_v58 = vsel %vm48_vm0, %v145_v50, 2147483647  ;;  %v87_v60 = vmul.f32 1.442695, %v85_v48  ;;  %v275_v49 = vmul.f32 %v271_v28, %v685_v0 }
  0x30   :  { %529 = vpow2.f32 %v89_v53  ;;  %v158_v61 = vsel %vm48_vm0, %v146_v54, 2147483647  ;;  %v169_v62 = vrot.slane %v168_v58, 4  ;;  %v178_v63 = vsel %vm48_vm0, %v147_v55, 2147483647 }
  0x31   :  { %vm150_vm3 = vcmp.lt.s32.totalorder %v148_v56, %v149_v57  ;;  %v159_v2 = vrot.slane %v158_v61, 4  ;;  %v179_v3 = vrot.slane %v178_v63, 4  ;;  %531 = vpow2.f32 %v87_v60 }
  0x32   :  { %v151_v4 = vsel %vm150_vm3, %v148_v56, %v149_v57  ;;  %vm170_vm4 = vcmp.lt.s32.totalorder %v168_v58, %v169_v62  ;;  %v276_v56 = vmul.f32 %v272_v44, %v687_v1  ;;  %v283_v1 = vsel %vm48_vm0, %v275_v49, 0.0 }
  0x33   :  { %v152_v5 = vrot.slane %v151_v4, 2  ;;  %vm160_vm7 = vcmp.lt.s32.totalorder %v158_v61, %v159_v2  ;;  %v171_v6 = vsel %vm170_vm4, %v168_v58, %v169_v62  ;;  %vm180_vm8 = vcmp.lt.s32.totalorder %v178_v63, %v179_v3 }
  0x34   :  { %v161_v7 = vsel %vm160_vm7, %v158_v61, %v159_v2  ;;  %v172_v8 = vrot.slane %v171_v6, 2  ;;  %v181_v9 = vsel %vm180_vm8, %v178_v63, %v179_v3  ;;  %v279_v63 = vcombine.high %v275_v49, %v275_v49 }
  0x35   :  { %vm153_vm10 = vcmp.lt.s32.totalorder %v151_v4, %v152_v5  ;;  %v162_v11 = vrot.slane %v161_v7, 2  ;;  %v182_v12 = vrot.slane %v181_v9, 2 }
  0x36   :  { %v154_v13 = vsel %vm153_vm10, %v151_v4, %v152_v5  ;;  %vm173_vm12 = vcmp.lt.s32.totalorder %v171_v6, %v172_v8  ;;  %vm409_vm10 = vcmp.eq.s32.totalorder %v700_v21, 2 }
  0x37   :  { %v155_v17 = vrot.slane %v154_v13, 1  ;;  %vm163_vm13 = vcmp.lt.s32.totalorder %v161_v7, %v162_v11  ;;  %v174_v18 = vsel %vm173_vm12, %v171_v6, %v172_v8  ;;  %vm183_vm14 = vcmp.lt.s32.totalorder %v181_v9, %v182_v12 }
  0x38   :  { %v164_v19 = vsel %vm163_vm13, %v161_v7, %v162_v11  ;;  %v175_v20 = vrot.slane %v174_v18, 1  ;;  %v184_v22 = vsel %vm183_vm14, %v181_v9, %v182_v12  ;;  %v280_v7 = vcombine.high %v276_v56, %v276_v56 }
  0x39   :  { %vm156_vm1 = vcmp.lt.s32.totalorder %v154_v13, %v155_v17  ;;  %v165_v23 = vrot.slane %v164_v19, 1  ;;  %v185_v24 = vrot.slane %v184_v22, 1  ;;  %v297_v12 = vsel %vm48_vm0, %v276_v56, 0.0 }
  0x3a   :  { %v157_v26 = vsel %vm156_vm1, %v154_v13, %v155_v17  ;;  %vm176_vm2 = vcmp.lt.s32.totalorder %v174_v18, %v175_v20 }
  0x3b   :  { %vm166_vm3 = vcmp.lt.s32.totalorder %v164_v19, %v165_v23  ;;  %v177_v29 = vsel %vm176_vm2, %v174_v18, %v175_v20  ;;  %vm186_vm4 = vcmp.lt.s32.totalorder %v184_v22, %v185_v24  ;;  %vm227_vm5 = vcmp.eq.s32.totalorder %v157_v26, %v722_v45 }
  0x3c   :  { %v167_v30 = vsel %vm166_vm3, %v164_v19, %v165_v23  ;;  %v187_v31 = vsel %vm186_vm4, %v184_v22, %v185_v24  ;;  %vm229_vm6 = vcmp.eq.s32.totalorder %v177_v29, %v731_v52  ;;  %v766_v33 = vsel %vm227_vm5, 1.0, %v656_v14 }
  0x3d   :  { %v530_v35 = vpop.eup %529  ;;  %vm228_vm7 = vcmp.eq.s32.totalorder %v167_v30, %v729_v51  ;;  %vm230_vm8 = vcmp.eq.s32.totalorder %v187_v31, %v735_v59  ;;  %v771_v37 = vsel %vm229_vm6, 1.0, %v656_v14  ;;  %v439_v47 = vsel %vm438_vm15, %v766_v33, 0.0 }
  0x3e   :  { %v532_v40 = vpop.eup %531  ;;  %v94_v41 = vcombine.high %v530_v35, %v530_v35  ;;  %v111_v42 = vsel %vm48_vm0, %v530_v35, 0.0  ;;  %v775_v43 = vsel %vm228_vm7, 1.0, %v656_v14  ;;  %v778_v46 = vsel %vm230_vm8, 1.0, %v656_v14 }
  0x3f   :  { %v112_v45 = vrot.slane %v111_v42, 4  ;;  %v440_v50 = vsel %vm438_vm15, %v775_v43, 0.0  ;;  %v442_v51 = vsel %vm438_vm15, %v771_v37, 0.0  ;;  %v93_v55 = vcombine.high %v532_v40, %v532_v40 }
  0x40   :  { %v118_v48 = vsel %vm48_vm0, %v94_v41, 0.0  ;;  %v441_v54 = vadd.f32 %v440_v50, %v439_v47  ;;  %v444_v57 = vsel %vm438_vm15, %v778_v46, 0.0  ;;  %v97_v58 = vsel %vm48_vm0, %v532_v40, 0.0 }
  0x41   :  { %v113_v52 = vadd.f32 %v112_v45, %v111_v42  ;;  %v119_v53 = vrot.slane %v118_v48, 4  ;;  %v98_v61 = vrot.slane %v97_v58, 4  ;;  %v104_v62 = vsel %vm48_vm0, %v93_v55, 0.0 }
  0x42   :  { %v443_v0 = vadd.f32 %v442_v51, %v441_v54  ;;  %v105_v6 = vrot.slane %v104_v62, 4  ;;  %v290_v18 = vsel %vm48_vm0, %v279_v63, 0.0  ;;  %v284_v20 = vrot.slane %v283_v1, 4 }
  0x43   :  { %v114_v59 = vrot.slane %v113_v52, 2  ;;  %v120_v60 = vadd.f32 %v119_v53, %v118_v48  ;;  %v99_v5 = vadd.f32 %v98_v61, %v97_v58  ;;  %v298_v22 = vrot.slane %v297_v12, 4 }
  0x44   :  { %v445_v4 = vadd.f32 %v444_v57, %v443_v0  ;;  %v106_v13 = vadd.f32 %v105_v6, %v104_v62  ;;  %v304_v23 = vsel %vm48_vm0, %v280_v7, 0.0  ;;  %v291_v27 = vrot.slane %v290_v18, 4 }
  0x45   :  { %v115_v2 = vadd.f32 %v114_v59, %v113_v52  ;;  %v121_v3 = vrot.slane %v120_v60, 2  ;;  %v100_v11 = vrot.slane %v99_v5, 2  ;;  %v305_v29 = vrot.slane %v304_v23, 4 }
  0x46   :  { %446 = vadd.xlane.f32.xlu0 %v445_v4  ;;  %v107_v19 = vrot.slane %v106_v13, 2  ;;  %v285_v31 = vadd.f32 %v284_v20, %v283_v1  ;;  %v299_v35 = vadd.f32 %v298_v22, %v297_v12  ;;  %v292_v41 = vadd.f32 %v291_v27, %v290_v18 }
  0x47   :  { %v116_v8 = vrot.slane %v115_v2, 1  ;;  %v122_v9 = vadd.f32 %v121_v3, %v120_v60  ;;  %v101_v17 = vadd.f32 %v100_v11, %v99_v5  ;;  %v306_v42 = vadd.f32 %v305_v29, %v304_v23 }
  0x48   :  { %v108_v26 = vadd.f32 %v107_v19, %v106_v13  ;;  %v286_v44 = vrot.slane %v285_v31, 2  ;;  %v300_v45 = vrot.slane %v299_v35, 2  ;;  %v293_v47 = vrot.slane %v292_v41, 2 }
  0x49   :  { %v117_v15 = vadd.f32 %v116_v8, %v115_v2  ;;  %v123_v16 = vrot.slane %v122_v9, 1  ;;  %v102_v25 = vrot.slane %v101_v17, 1  ;;  %v329_v48 = vsub.f32 1.0, %v771_v37 }
  0x4a   :  { %v109_v30 = vrot.slane %v108_v26, 1  ;;  %v307_v49 = vrot.slane %v306_v42, 2  ;;  %v287_v50 = vadd.f32 %v286_v44, %v285_v31  ;;  %v301_v51 = vadd.f32 %v300_v45, %v299_v35 }
  0x4b   :  { %v124_v24 = vadd.f32 %v123_v16, %v122_v9  ;;  %533 = vrcp.f32 %v117_v15  ;;  %v103_v28 = vadd.f32 %v102_v25, %v101_v17  ;;  %v330_v52 = vsub.f32 1.0, %v778_v46 }
  0x4c   :  { %535 = vlog2.f32 %v117_v15  ;;  %v110_v40 = vadd.f32 %v109_v30, %v108_v26  ;;  %v294_v54 = vadd.f32 %v293_v47, %v292_v41  ;;  %v308_v58 = vadd.f32 %v307_v49, %v306_v42 }
  0x4d   :  { %537 = vrcp.f32 %v124_v24  ;;  %v327_v60 = vsub.f32 1.0, %v766_v33  ;;  %v288_v0 = vrot.slane %v287_v50, 1  ;;  %v302_v61 = vrot.slane %v301_v51, 1 }
  0x4e   :  { %539 = vlog2.f32 %v124_v24  ;;  %v328_v6 = vsub.f32 1.0, %v775_v43  ;;  %v295_v7 = vrot.slane %v294_v54, 1  ;;  %v309_v12 = vrot.slane %v308_v58, 1 }
  0x4f   :  { %541 = vrcp.f32 %v103_v28  ;;  %v289_v16 = vadd.f32 %v288_v0, %v287_v50  ;;  %v303_v19 = vadd.f32 %v302_v61, %v301_v51  ;;  %vm384_vm0 = vcmp.eq.s32.totalorder %v700_v21, 1 }
  0x50   :  { %543 = vlog2.f32 %v103_v28  ;;  %v296_v26 = vadd.f32 %v295_v7, %v294_v54  ;;  %v310_v27 = vadd.f32 %v309_v12, %v308_v58 }
  0x51   :  { %545 = vrcp.f32 %v110_v40 }
  0x52   :  { %547 = vlog2.f32 %v110_v40 }
  0x58   :  { %v534_v53 = vpop.eup %533 }
  0x59   :  { %v536_v55 = vpop.eup %535  ;;  %v321_v56 = vsub.f32 1.0, %v534_v53  ;;  %v799_v57 = vmul.f32 %v534_v53, %v329_v48  ;;  %v341_v47 = vmul.f32 2.5, %v534_v53 }
  0x5a   :  { %v538_v59 = vpop.eup %537  ;;  %v248_v4 = vmul.f32 0.6931472, %v536_v55  ;;  %v353_v55 = vmul.f32 -2.5, %v534_v53 }
  0x5b   :  { %v540_v62 = vpop.eup %539  ;;  %v322_v63 = vsub.f32 1.0, %v538_v59  ;;  %v803_v2 = vmul.f32 %v771_v37, %v321_v56  ;;  %v805_v3 = vmul.f32 %v538_v59, %v330_v52  ;;  %v342_v48 = vmul.f32 2.5, %v538_v59 }
  0x5c   :  { %v542_v5 = vpop.eup %541  ;;  %v250_v11 = vmul.f32 0.6931472, %v540_v62  ;;  %v253_v18 = vadd.f32 %v248_v4, %v705_v34  ;;  %v347_v50 = vmul.f32 1.442695, %v341_v47  ;;  %v354_v56 = vmul.f32 -2.5, %v538_v59 }
  0x5d   :  { %v544_v1 = vpop.eup %543  ;;  %v809_v8 = vmul.f32 %v778_v46, %v322_v63  ;;  %v319_v9 = vsub.f32 1.0, %v542_v5  ;;  %v811_v13 = vmul.f32 %v542_v5, %v327_v60  ;;  %v339_v45 = vmul.f32 2.5, %v542_v5 }
  0x5e   :  { %v244_v15 = vmul.f32 0.6931472, %v544_v1  ;;  %v546_v37 = vpop.eup %545  ;;  %v254_v25 = vadd.f32 %v250_v11, %v712_v39  ;;  %v313_v31 = vsub.f32 %v253_v18, %v303_v19  ;;  %v349_v51 = vmul.f32 1.442695, %v342_v48 }
  0x5f   :  { %v323_v17 = vmul.f32 %v766_v33, %v319_v9  ;;  %v548_v20 = vpop.eup %547  ;;  %v320_v22 = vsub.f32 1.0, %v546_v37  ;;  %v332_v23 = vmul.f32 %v546_v37, %v328_v6  ;;  %v351_v52 = vmul.f32 -2.5, %v542_v5 }
  0x60   :  { %v251_v24 = vadd.f32 %v244_v15, %v703_v32  ;;  %v246_v46 = vmul.f32 0.6931472, %v548_v20  ;;  %v314_v35 = vsub.f32 %v254_v25, %v310_v27  ;;  %v460_v41 = vsel %vm438_vm15, %v313_v31, 0.0 }
  0x61   :  { %v324_v28 = vmul.f32 %v775_v43, %v320_v22  ;;  %v340_v43 = vmul.f32 2.5, %v546_v37  ;;  %v352_v54 = vmul.f32 -2.5, %v546_v37  ;;  %v355_v58 = vmul.f32 1.442695, %v351_v52 }
  0x62   :  { %v311_v29 = vsub.f32 %v251_v24, %v289_v16  ;;  %v252_v30 = vadd.f32 %v246_v46, %v710_v38  ;;  %v462_v42 = vsel %vm438_vm15, %v314_v35, 0.0  ;;  %v343_v38 = vmul.f32 1.442695, %v339_v45 }
  0x63   :  { %v345_v49 = vmul.f32 1.442695, %v340_v43  ;;  %v357_v60 = vmul.f32 1.442695, %v352_v54  ;;  %v359_v0 = vmul.f32 1.442695, %v353_v55  ;;  %v375_v62 = vrot.slane %v803_v2, %v708_v36 }
  0x64   :  { %v312_v33 = vsub.f32 %v252_v30, %v296_v26  ;;  %v457_v34 = vsel %vm438_vm15, %v311_v29, 0.0  ;;  %549 = vpow2.f32 %v343_v38  ;;  %v361_v61 = vmul.f32 1.442695, %v354_v56 }
  0x65   :  { %551 = vpow2.f32 %v345_v49  ;;  %v396_v63 = vrot.slane %v799_v57, %v708_v36  ;;  %v379_v4 = vrot.slane %v809_v8, %v708_v36  ;;  %v367_v53 = vrot.slane %v323_v17, %v708_v36 }
  0x66   :  { %v458_v40 = vsel %vm438_vm15, %v312_v33, 0.0  ;;  %553 = vpow2.f32 %v347_v50  ;;  %v371_v59 = vrot.slane %v324_v28, %v708_v36  ;;  %v400_v5 = vrot.slane %v805_v3, %v708_v36 }
  0x67   :  { %v459_v32 = vadd.f32 %v458_v40, %v457_v34  ;;  %555 = vpow2.f32 %v349_v51  ;;  %v388_v6 = vrot.slane %v811_v13, %v708_v36  ;;  %v392_v2 = vrot.slane %v332_v23, %v708_v36 }
  0x68   :  { %557 = vpow2.f32 %v355_v58  ;;  %v382_v57 = vsel %vm363_vm9, %v375_v62, 0.0  ;;  %v383_v7 = vsel %vm363_vm9, %v379_v4, 0.0  ;;  %v380_v3 = vsel %vm363_vm9, %v367_v53, 0.0 }
  0x69   :  { %v461_v39 = vadd.f32 %v460_v41, %v459_v32  ;;  %559 = vpow2.f32 %v357_v60  ;;  %v381_v1 = vsel %vm363_vm9, %v371_v59, 0.0  ;;  %v401_v36 = vsel %vm384_vm0, %v388_v6, 0.0 }
  0x6a   :  { %561 = vpow2.f32 %v359_v0  ;;  %v402_v8 = vsel %vm384_vm0, %v392_v2, 0.0  ;;  %v403_v9 = vsel %vm384_vm0, %v396_v63, 0.0  ;;  %v404_v11 = vsel %vm384_vm0, %v400_v5, 0.0 }
  0x6b   :  { %v463_v44 = vadd.f32 %v462_v42, %v461_v39  ;;  %563 = vpow2.f32 %v361_v61  ;;  %v405_v13 = vadd.f32 %v401_v36, %v380_v3  ;;  %v406_v15 = vadd.f32 %v402_v8, %v381_v1 }
  0x6c   :  { %v407_v16 = vadd.f32 %v403_v9, %v382_v57  ;;  %v408_v37 = vadd.f32 %v404_v11, %v383_v7 }
  0x6d   :  { %464 = vadd.xlane.f32.xlu0 %v463_v44 }
  0x71   :  { %v550_v12 = vpop.eup %549 }
  0x72   :  { %v552_v17 = vpop.eup %551  ;;  %v410_v19 = vsel %vm409_vm10, %v550_v12, 0.0 }
  0x73   :  { %v554_v18 = vpop.eup %553  ;;  %v411_v20 = vsel %vm409_vm10, %v552_v17, 0.0  ;;  %v414_v24 = vadd.f32 %v410_v19, %v405_v13 }
  0x74   :  { %v556_v22 = vpop.eup %555  ;;  %v412_v23 = vsel %vm409_vm10, %v554_v18, 0.0  ;;  %v415_v46 = vadd.f32 %v411_v20, %v406_v15 }
  0x75   :  { %v558_v25 = vpop.eup %557  ;;  %v413_v26 = vsel %vm409_vm10, %v556_v22, 0.0  ;;  %v416_v27 = vadd.f32 %v412_v23, %v407_v16 }
  0x76   :  { %v560_v28 = vpop.eup %559  ;;  %v417_v29 = vadd.f32 %v413_v26, %v408_v37  ;;  %v419_v30 = vsel %vm418_vm11, %v558_v25, 0.0 }
  0x77   :  { %v562_v31 = vpop.eup %561  ;;  %v420_v33 = vsel %vm418_vm11, %v560_v28, 0.0  ;;  %v423_v35 = vadd.f32 %v419_v30, %v414_v24 }
  0x78   :  { %v564_v34 = vpop.eup %563  ;;  %v421_v40 = vsel %vm418_vm11, %v562_v31, 0.0  ;;  %v424_v41 = vadd.f32 %v420_v33, %v415_v46 }
  0x79   :  { %v422_v32 = vsel %vm418_vm11, %v564_v34, 0.0  ;;  %v425_v42 = vadd.f32 %v421_v40, %v416_v27  ;;  %427 = vst [vmem:[#allocation7] sm:$0xff] %v423_v35 }
  0x7a   :  { %v426_v39 = vadd.f32 %v422_v32, %v417_v29  ;;  %428 = vst [vmem:[#allocation7 + $0x8] sm:$0xff] %v424_v41 }
  0x7b   :  { %429 = vst [vmem:[#allocation7 + $0x10] sm:$0xff] %v425_v42 }
  0x7c   :  { %430 = vst [vmem:[#allocation7 + $0x18] sm:$0xff] %v426_v39 }
  0x7d   :  { %616 = shalt.err (!%p613_p0)
}
  0x7e   :  { %486 = dma.vmem_to_hbm [thread:$0]  %s484_s1, 512, %s879_s2, [#allocation4]   ;;  %v190_v60 = vand.u32 127, %v133_v10 }
  0x7f   :  { %s658_s26 = smov [#allocation8]  }
  0x80   :  { %vm431_vm12 = vcmp.eq.s32.totalorder %v190_v60, 0  ;;  %s493_s27 = sshll.u32 %s658_s26, 4  ;;  %s494_s27 = int_to_ptr.vmem [resolvable:$true] %s493_s27 }
  0x81   :  { %vm432_vm13 = vmand %vm363_vm9, %vm431_vm12  ;;  %s625_s28 = scalar_lea.vmem %s494_s27, 128  ;;  %p630_p2 = scmp.lt.s32.totalorder %s494_s27, %s494_s27 }
  0x82   :  { %vm435_vm14 = vmand %vm384_vm0, %vm431_vm12  ;;  %v515_v0 = vsel %vm432_vm13, 1.0, %v656_v14  ;;  %p626_p1 = scmp.ne.s32.totalorder %s494_s27, %s625_s28  ;;  %p631_p3 = scmp.lt.s32.totalorder %s625_s28, %s625_s28 }
  0x83   :  { %v516_v62 = vsel %vm435_vm14, 1.0, %v656_v14 }
  0x84   :  { %p632_p4 = por %p631_p3, %p630_p2 }
  0x86   :  { %p633_p5 = pnand %p632_p4, %p626_p1 }
  0xcf   :  { %v447_v44 = vpop.xlane.xlu0 %446 }
  0xd0   :  { %v448_v45 = vrot.slane %v447_v44, 4 }
  0xd2   :  { %v449_v43 = vadd.f32 %v448_v45, %v447_v44 }
  0xd4   :  { %v450_v47 = vrot.slane %v449_v43, 2 }
  0xd6   :  { %v451_v48 = vadd.f32 %v450_v47, %v449_v43 }
  0xd8   :  { %v452_v38 = vrot.slane %v451_v48, 1 }
  0xda   :  { %v453_v49 = vadd.f32 %v452_v38, %v451_v48 }
  0xdc   :  { %517 = vpush %v453_v49 }
  0xf6   :  { %v465_v50 = vpop.xlane.xlu0 %464 }
  0xf7   :  { %v466_v51 = vrot.slane %v465_v50, 4 }
  0xf9   :  { %v467_v52 = vadd.f32 %v466_v51, %v465_v50 }
  0xfb   :  { %v468_v54 = vrot.slane %v467_v52, 2 }
  0xfd   :  { %v469_v55 = vadd.f32 %v468_v54, %v467_v52 }
  0xff   :  { %v470_v56 = vrot.slane %v469_v55, 1 }
 0x101   :  { %v471_v58 = vadd.f32 %v470_v56, %v469_v55 }
 0x103   :  { %519 = vpush %v471_v58 }
 0x10d   :  { %s518_s2 = spop %517 }
 0x10e   :  { %v455_v61 = vstv %s518_s2 }
 0x10f   :  { %v456_v4 = vmul.f32 %v515_v0, %v455_v61 }
 0x134   :  { %s520_s25 = spop %519 }
 0x135   :  { %v473_v63 = vstv %s520_s25 }
 0x136   :  { %v474_v53 = vmul.f32 %v516_v62, %v473_v63 }
 0x138   :  { %v475_v10 = vadd.f32 %v474_v53, %v456_v4 }
 0x13a   :  { %476 = vst [vmem:[#allocation8] sm:$0xff] %v475_v10 }
 0x13b   :  { %636 = shalt.err (!%p633_p5)
}
 0x13c   :  { %496 = dma.vmem_to_hbm [thread:$0]  %s494_s27, 128, %s880_s3, [#allocation9]  }
 0x13d   :  { %649 = dma.done.wait [#allocation4], 512  }
 0x13e   :  { %650 = vsyncadd [#allocation4], 4294966784 }
 0x13f   :  { %651 = dma.done.wait [#allocation9], 128  }
 0x140   :  { %652 = vsyncadd [#allocation9], 4294967168 }
 0x141   :  { %503 = vsyncpa [#allocation3], 1 }
 0x142   :  { %504 = vsyncpa [#allocation6], 1 }
 0x143   :  { %505 = vsyncpa [#allocation4], 1 }
 0x144   :  { %506 = vsyncpa [#allocation9], 1 }

</bundles_post_ra>
